<compile_context>
chip_gen: v7x
topology: tpu7x:2x2x1
jax: 0.10.0
libtpu: 0.0.40
codegen_flags: <defaults>
</compile_context>

<pallas_src>
import functools

import jax
import jax.numpy as jnp
from jax.experimental import pallas as pl
from jax.experimental.pallas import tpu as pltpu


# ----------------------------------------------------------------------------
# tiling helpers
# ----------------------------------------------------------------------------
def _pick_tile(dim, target, quantum):
    """Largest multiple of `quantum` dividing `dim`, <= target.  If dim <= target
    use the full dim.  If no divisor exists, return the quantum-rounded target
    (caller zero-pads the array to a multiple of it)."""
    if dim <= target:
        return dim
    t = (target // quantum) * quantum
    while t >= quantum:
        if dim % t == 0:
            return t
        t -= quantum
    return (target // quantum) * quantum


def _pick_tile_exact(dim, target, quantum):
    """Like _pick_tile but never requires padding (falls back to the full dim)."""
    if dim <= target:
        return dim
    t = (target // quantum) * quantum
    while t >= quantum:
        if dim % t == 0:
            return t
        t -= quantum
    # TODO(synk): masked remainder tiles for awkward sequence lengths.
    return dim


def _pad_axis(a, axis, multiple):
    pad = (-a.shape[axis]) % multiple
    if pad == 0:
        return a
    widths = [(0, 0)] * a.ndim
    widths[axis] = (0, pad)
    return jnp.pad(a, widths)


# ----------------------------------------------------------------------------
# Tiled, pipelined linear:  x[M,K] @ w[K,N] + b[N] -> [M,N]   (f32 accumulate)
# ----------------------------------------------------------------------------
def _linear_kernel(x_ref, w_ref, b_ref, o_ref, acc_ref):
    k = pl.program_id(2)

    @pl.when(k == 0)
    def _init():
        acc_ref[...] = jnp.zeros_like(acc_ref)

    acc_ref[...] += jnp.dot(x_ref[...], w_ref[...],
                            preferred_element_type=jnp.float32)

    @pl.when(k == pl.num_programs(2) - 1)
    def _store():
        o_ref[...] = (acc_ref[...] + b_ref[...]).astype(o_ref.dtype)


def pallas_linear(x, w, b, *, out_dtype,
                  tm_target=512, tn_target=512, tk_target=512):
    M, K = x.shape
    N = w.shape[1]
    tm = _pick_tile(M, tm_target, 8)
    tn = _pick_tile(N, tn_target, 128)
    tk = _pick_tile(K, tk_target, 128)
    # zero-pad any dimension without a clean divisor (padding is a no-op for the
    # math: padded K contributes 0, padded M/N rows/cols are sliced off).
    xp = _pad_axis(_pad_axis(x, 0, tm), 1, tk)
    wp = _pad_axis(_pad_axis(w, 0, tk), 1, tn)
    bp = _pad_axis(b.reshape(1, N).astype(jnp.float32), 1, tn)
    Mp, Kp = xp.shape
    Np = wp.shape[1]
    out = pl.pallas_call(
        _linear_kernel,
        out_shape=jax.ShapeDtypeStruct((Mp, Np), out_dtype),
        grid=(Mp // tm, Np // tn, Kp // tk),
        in_specs=[
            pl.BlockSpec((tm, tk), lambda i, j, k: (i, k)),
            pl.BlockSpec((tk, tn), lambda i, j, k: (k, j)),
            pl.BlockSpec((1, tn), lambda i, j, k: (0, j)),
        ],
        out_specs=pl.BlockSpec((tm, tn), lambda i, j, k: (i, j)),
        scratch_shapes=[pltpu.VMEM((tm, tn), jnp.float32)],
        compiler_params=pltpu.CompilerParams(
            dimension_semantics=("parallel", "parallel", "arbitrary"),
            # above the 32 MiB scoped default, below v7x's 64 MiB physical VMEM
            vmem_limit_bytes=48 * 1024 * 1024,
        ),
    )(xp, wp, bp)
    if (Mp, Np) != (M, N):
        out = out[:M, :N]
    return out


# ----------------------------------------------------------------------------
# Flash-style relative-position attention over a head-major [B*H, L, d] layout.
# Grid: (B*H, Lq//tq, Lk//tk), Lk innermost ("arbitrary") with m/l/acc scratch.
# ----------------------------------------------------------------------------
def _flash_rel_attn_kernel(q_ref, k_ref, v_ref, rkT_ref, rv_ref, o_ref,
                           m_sc, l_sc, acc_sc, *, q_block, k_block, max_rel):
    qi = pl.program_id(1)
    ki = pl.program_id(2)
    R = max_rel
    nb = 2 * R + 1

    @pl.when(ki == 0)
    def _init():
        m_sc[...] = jnp.full_like(m_sc, -jnp.inf)
        l_sc[...] = jnp.zeros_like(l_sc)
        acc_sc[...] = jnp.zeros_like(acc_sc)

    qh = q_ref[0]                                   # [tq, d]  (lane-aligned slab)
    kh = k_ref[0]                                   # [tk, d]
    vh = v_ref[0]                                   # [tk, d]

    # content-content scores (MXU); f32 accumulate
    # TODO(synk): optionally pre-transpose K tiles to spare the per-step XLU transpose.
    s = jax.lax.dot_general(qh, kh, (((1,), (1,)), ((), ())),
                            preferred_element_type=jnp.float32)        # [tq, tk]

    # content-position scores against the tiny (2R+1, d) table (MXU, K=d, N=2R+1)
    t = jnp.dot(qh, rkT_ref[...], preferred_element_type=jnp.float32)  # [tq, nb]

    tq, tk = s.shape
    q_pos = qi * q_block + jax.lax.broadcasted_iota(jnp.int32, (tq, tk), 0)
    k_pos = ki * k_block + jax.lax.broadcasted_iota(jnp.int32, (tq, tk), 1)
    dist = jnp.clip(k_pos - q_pos, -R, R) + R                           # [tq, tk]
    # band masks built once per step, reused for attn2 AND the rel-V mass
    masks = [dist == r for r in range(nb)]

    attn2 = jnp.zeros_like(s)
    for r in range(nb):
        attn2 = attn2 + jnp.where(masks[r], t[:, r:r + 1], 0.0)

    scores = (s + attn2) * 0.5                       # matches PyTorch "/ 2"
    # TODO(synk): mask=None path only; dropout is identity (eval mode).

    # online softmax (all f32 on the VPU/EUP)
    m_prev = m_sc[...]
    m_new = jnp.maximum(m_prev, jnp.max(scores, axis=-1, keepdims=True))
    alpha = jnp.exp(m_prev - m_new)
    p = jnp.exp(scores - m_new)                      # [tq, tk]
    l_sc[...] = alpha * l_sc[...] + jnp.sum(p, axis=-1, keepdims=True)
    m_sc[...] = m_new

    # content part (MXU) + relative-V part folded in via 2R+1 rank-1 updates
    upd = jnp.dot(p.astype(vh.dtype), vh, preferred_element_type=jnp.float32)  # [tq, d]
    rv = rv_ref[...].astype(jnp.float32)             # [nb, d]
    for r in range(nb):
        pr = jnp.sum(jnp.where(masks[r], p, 0.0), axis=-1, keepdims=True)       # [tq, 1]
        upd = upd + pr * rv[r:r + 1, :]
    acc_sc[...] = alpha * acc_sc[...] + upd

    @pl.when(ki == pl.num_programs(2) - 1)
    def _finalize():
        o_ref[0] = (acc_sc[...] / l_sc[...]).astype(o_ref.dtype)


def pallas_rel_attention(q, k, v, rel_k_t, rel_v, *, max_rel, out_dtype,
                         tq_target=128, tk_target=128):
    # q, k, v: [B*H, L, d]
    BH, Lq, d = q.shape
    Lk = k.shape[1]
    nb = 2 * max_rel + 1
    tq = _pick_tile_exact(Lq, tq_target, 8)
    tk = _pick_tile_exact(Lk, tk_target, 8)
    kernel = functools.partial(_flash_rel_attn_kernel,
                               q_block=tq, k_block=tk, max_rel=max_rel)
    return pl.pallas_call(
        kernel,
        out_shape=jax.ShapeDtypeStruct((BH, Lq, d), out_dtype),
        grid=(BH, Lq // tq, Lk // tk),
        in_specs=[
            pl.BlockSpec((1, tq, d), lambda b, qi, ki: (b, qi, 0)),
            pl.BlockSpec((1, tk, d), lambda b, qi, ki: (b, ki, 0)),
            pl.BlockSpec((1, tk, d), lambda b, qi, ki: (b, ki, 0)),
            pl.BlockSpec((d, nb), lambda b, qi, ki: (0, 0)),
            pl.BlockSpec((nb, d), lambda b, qi, ki: (0, 0)),
        ],
        out_specs=pl.BlockSpec((1, tq, d), lambda b, qi, ki: (b, qi, 0)),
        scratch_shapes=[
            pltpu.VMEM((tq, 1), jnp.float32),   # running max
            pltpu.VMEM((tq, 1), jnp.float32),   # running denom
            pltpu.VMEM((tq, d), jnp.float32),   # running numerator (w1 + w2)
        ],
        compiler_params=pltpu.CompilerParams(
            dimension_semantics=("parallel", "parallel", "arbitrary"),
            vmem_limit_bytes=48 * 1024 * 1024,
        ),
    )(q, k, v, rel_k_t, rel_v)


# ----------------------------------------------------------------------------
# Parameters and forward (glue in plain JAX)
# ----------------------------------------------------------------------------
def xavier_uniform(key, shape):
    fan_in, fan_out = shape[0], shape[1]
    limit = jnp.sqrt(6.0 / (fan_in + fan_out))
    return jax.random.uniform(key, shape, jnp.float32, -limit, limit)


def init_params(key, hid_dim, n_heads, max_rel):
    assert hid_dim % n_heads == 0
    head_dim = hid_dim // n_heads
    keys = jax.random.split(key, 10)
    p = {}
    for i, name in enumerate(["q", "k", "v", "o"]):
        p[f"W{name}"] = xavier_uniform(keys[i], (hid_dim, hid_dim))
        p[f"b{name}"] = jax.random.uniform(
            keys[i + 4], (hid_dim,), jnp.float32, -0.05, 0.05)
    p["rel_k_table"] = xavier_uniform(keys[8], (2 * max_rel + 1, head_dim))
    p["rel_v_table"] = xavier_uniform(keys[9], (2 * max_rel + 1, head_dim))
    return p


def mha_forward(params, query, key, value, n_heads, max_rel,
                compute_dtype=jnp.float32, fused_qkv=False):
    """fused_qkv=True is the self-attention fast path (query/key/value same data):
    a single x @ [Wq|Wk|Wv] projection matmul.  compute_dtype=bfloat16 is the
    recommended MXU-operand dtype on v6e/v7x (f32 accumulation throughout)."""
    B, Lq, hid = query.shape
    Lk = key.shape[1]
    assert hid % n_heads == 0 and key.shape[1] == value.shape[1]
    d = hid // n_heads
    cd = compute_dtype

    Wq, Wk, Wv, Wo = params["Wq"], params["Wk"], params["Wv"], params["Wo"]
    bq, bk, bv, bo = params["bq"], params["bk"], params["bv"], params["bo"]

    if fused_qkv:
        # self-attention: read x once, 3x N-reuse per x tile
        x2 = query.reshape(B * Lq, hid).astype(cd)
        w_qkv = jnp.concatenate([Wq, Wk, Wv], axis=1).astype(cd)   # [hid, 3*hid]
        b_qkv = jnp.concatenate([bq, bk, bv], axis=0)
        qkv = pallas_linear(x2, w_qkv, b_qkv, out_dtype=cd)        # [B*L, 3*hid]
        q2, k2, v2 = qkv[:, :hid], qkv[:, hid:2 * hid], qkv[:, 2 * hid:]
        Lk = Lq
    else:
        q2 = pallas_linear(query.reshape(B * Lq, hid).astype(cd), Wq.astype(cd),
                           bq, out_dtype=cd)
        k2 = pallas_linear(key.reshape(B * Lk, hid).astype(cd), Wk.astype(cd),
                           bk, out_dtype=cd)
        v2 = pallas_linear(value.reshape(B * Lk, hid).astype(cd), Wv.astype(cd),
                           bv, out_dtype=cd)

    # head-major, lane-aligned [B*H, L, d] layout for the attention kernel
    def to_heads(x2d, L):
        return x2d.reshape(B, L, n_heads, d).transpose(0, 2, 1, 3).reshape(
            B * n_heads, L, d)

    qh, kh, vh = to_heads(q2, Lq), to_heads(k2, Lk), to_heads(v2, Lk)

    rkT = params["rel_k_table"].T.astype(cd)   # [d, 2R+1]
    rv = params["rel_v_table"].astype(cd)      # [2R+1, d]

    attn = pallas_rel_attention(qh, kh, vh, rkT, rv, max_rel=max_rel,
                                out_dtype=cd)                       # [B*H, Lq, d]
    attn = attn.reshape(B, n_heads, Lq, d).transpose(0, 2, 1, 3).reshape(
        B * Lq, hid)

    out = pallas_linear(attn.astype(cd), Wo.astype(cd), bo, out_dtype=jnp.float32)
    return out.reshape(B, Lq, hid)


# ----------------------------------------------------------------------------
# Pure-JAX reference (mirrors PyTorch forward exactly; eval mode, no mask)
# ----------------------------------------------------------------------------
def relative_embeddings(table, length_q, length_k, max_rel):
    rq = jnp.arange(length_q)
    rk = jnp.arange(length_k)
    dist = rk[None, :] - rq[:, None]
    idx = jnp.clip(dist, -max_rel, max_rel) + max_rel
    return table[idx]


def mha_reference(params, query, key, value, n_heads, max_rel):
    B, Lq, hid = query.shape
    Lk = key.shape[1]
    hd = hid // n_heads
    q = query @ params["Wq"] + params["bq"]
    k = key @ params["Wk"] + params["bk"]
    v = value @ params["Wv"] + params["bv"]
    qh = q.reshape(B, Lq, n_heads, hd).transpose(0, 2, 1, 3)
    kh = k.reshape(B, Lk, n_heads, hd).transpose(0, 2, 1, 3)
    vh = v.reshape(B, Lk, n_heads, hd).transpose(0, 2, 1, 3)
    attn1 = jnp.einsum("bhqd,bhkd->bhqk", qh, kh)
    rel_k = relative_embeddings(params["rel_k_table"], Lq, Lk, max_rel)
    rel_v = relative_embeddings(params["rel_v_table"], Lq, Lk, max_rel)
    attn2 = jnp.einsum("bhqd,qkd->bhqk", qh, rel_k)
    attn = jax.nn.softmax((attn1 + attn2) / 2.0, axis=-1)
    w1 = jnp.einsum("bhqk,bhkd->bhqd", attn, vh)
    w2 = jnp.einsum("bhqk,qkd->bhqd", attn, rel_v)
    x = (w1 + w2).transpose(0, 2, 1, 3).reshape(B, Lq, hid)
    return x @ params["Wo"] + params["bo"]


if __name__ == "__main__":
    B, L, hid_dim, n_heads = 2, 8, 32, 4
    max_rel = 2

    key0 = jax.random.PRNGKey(0)
    kp, kx = jax.random.split(key0)
    params = init_params(kp, hid_dim, n_heads, max_rel)
    x = jax.random.normal(kx, (B, L, hid_dim), jnp.float32)

    # Reference at both MXU precision regimes: the Pallas kernel's f32 matmuls are
    # float32-accurate, while XLA's default f32 matmul may round operands to bf16.
    # Accept a tight match against either regime.
    with jax.default_matmul_precision("float32"):
        ref_hi = mha_reference(params, x, x, x, n_heads, max_rel)
    ref_lo = mha_reference(params, x, x, x, n_heads, max_rel)

    # f32 path (exact semantics)
    fwd32 = jax.jit(functools.partial(mha_forward, n_heads=n_heads, max_rel=max_rel,
                                      compute_dtype=jnp.float32, fused_qkv=True))
    out32 = jax.block_until_ready(fwd32(params, x, x, x))
    assert out32.shape == (B, L, hid_dim)
    ok32 = bool(jnp.allclose(out32, ref_hi, rtol=2e-3, atol=2e-3)) or \
           bool(jnp.allclose(out32, ref_lo, rtol=2e-3, atol=2e-3))
    assert ok32, "f32 kernel mismatch vs reference"

    # bf16 MXU-operand path (v6e/v7x oriented); norm-relative error check
    fwd16 = jax.jit(functools.partial(mha_forward, n_heads=n_heads, max_rel=max_rel,
                                      compute_dtype=jnp.bfloat16, fused_qkv=True))
    out16 = jax.block_until_ready(fwd16(params, x, x, x)).astype(jnp.float32)
    rel_err = float(jnp.linalg.norm(out16 - ref_hi) / jnp.linalg.norm(ref_hi))
    assert rel_err < 5e-2, f"bf16 kernel rel-err too high: {rel_err}"

    print("KERNEL_OK")
</pallas_src>

<mosaic_0001>
module attributes {stable_mosaic.version = 11 : i64} {
  func.func @_linear_kernel(%arg0: i32, %arg1: i32, %arg2: i32, %arg3: memref<16x32xf32, #tpu.memory_space<vmem>>, %arg4: memref<32x96xf32, #tpu.memory_space<vmem>>, %arg5: memref<1x96xf32, #tpu.memory_space<vmem>>, %arg6: memref<16x96xf32, #tpu.memory_space<vmem>>, %arg7: memref<16x96xf32, #tpu.memory_space<vmem>>) attributes {dimension_semantics = [#tpu.dimension_semantics<parallel>, #tpu.dimension_semantics<parallel>, #tpu.dimension_semantics<arbitrary>], iteration_bounds = array<i64: 1, 1, 1>, scalar_prefetch = 0 : i64, scratch_operands = 1 : i64, tpu.core_type = #tpu.core_type<tc>, window_params = [{transform_indices = @transform_0, window_bounds = array<i64: 16, 32>}, {transform_indices = @transform_1, window_bounds = array<i64: 32, 96>}, {transform_indices = @transform_2, window_bounds = array<i64: 1, 96>}, {transform_indices = @transform_3, window_bounds = array<i64: 16, 96>}]} {
    %c0_i32 = arith.constant 0 : i32
    %0 = arith.cmpi eq, %arg2, %c0_i32 : i32
    %1 = arith.extui %0 : i1 to i32
    %c0_i32_0 = arith.constant 0 : i32
    %2 = arith.cmpi ne, %1, %c0_i32_0 : i32
    scf.if %2 {
      %cst_10 = arith.constant 0.000000e+00 : f32
      %12 = vector.broadcast %cst_10 : f32 to vector<16x96xf32>
      %c0_11 = arith.constant 0 : index
      %c0_12 = arith.constant 0 : index
      %13 = vector.load %arg7[%c0_11, %c0_12] : memref<16x96xf32, #tpu.memory_space<vmem>>, vector<16x96xf32>
      tpu.vector_store %arg7[%c0_11, %c0_12], %12 {strides = array<i32>} : memref<16x96xf32, #tpu.memory_space<vmem>>, vector<16x96xf32>,
    } else {
    }
    %c0 = arith.constant 0 : index
    %c0_1 = arith.constant 0 : index
    %3 = vector.load %arg7[%c0, %c0_1] : memref<16x96xf32, #tpu.memory_space<vmem>>, vector<16x96xf32>
    %c0_2 = arith.constant 0 : index
    %c0_3 = arith.constant 0 : index
    %4 = vector.load %arg3[%c0_2, %c0_3] : memref<16x32xf32, #tpu.memory_space<vmem>>, vector<16x32xf32>
    %c0_4 = arith.constant 0 : index
    %c0_5 = arith.constant 0 : index
    %5 = vector.load %arg4[%c0_4, %c0_5] : memref<32x96xf32, #tpu.memory_space<vmem>>, vector<32x96xf32>
    %cst = arith.constant dense<0.000000e+00> : vector<16x96xf32>
    %6 = tpu.matmul %4, %5, %cst {dimension_numbers = #tpu.dot_dimension_numbers<[1], [0], [0], [1], [0, 0, 1, 1], [], []>} : vector<16x32xf32>, vector<32x96xf32>, vector<16x96xf32> -> vector<16x96xf32>
    %7 = arith.addf %3, %6 : vector<16x96xf32>
    %c0_6 = arith.constant 0 : index
    %c0_7 = arith.constant 0 : index
    %8 = vector.load %arg7[%c0_6, %c0_7] : memref<16x96xf32, #tpu.memory_space<vmem>>, vector<16x96xf32>
    tpu.vector_store %arg7[%c0_6, %c0_7], %7 {strides = array<i32>} : memref<16x96xf32, #tpu.memory_space<vmem>>, vector<16x96xf32>,
    %c0_i32_8 = arith.constant 0 : i32
    %9 = arith.cmpi eq, %arg2, %c0_i32_8 : i32
    %10 = arith.extui %9 : i1 to i32
    %c0_i32_9 = arith.constant 0 : i32
    %11 = arith.cmpi ne, %10, %c0_i32_9 : i32
    scf.if %11 {
      %c0_10 = arith.constant 0 : index
      %c0_11 = arith.constant 0 : index
      %12 = vector.load %arg7[%c0_10, %c0_11] : memref<16x96xf32, #tpu.memory_space<vmem>>, vector<16x96xf32>
      %c0_12 = arith.constant 0 : index
      %c0_13 = arith.constant 0 : index
      %13 = vector.load %arg5[%c0_12, %c0_13] : memref<1x96xf32, #tpu.memory_space<vmem>>, vector<1x96xf32>
      %14 = vector.broadcast %13 : vector<1x96xf32> to vector<16x96xf32>
      %15 = arith.addf %12, %14 : vector<16x96xf32>
      %c0_14 = arith.constant 0 : index
      %c0_15 = arith.constant 0 : index
      %16 = vector.load %arg6[%c0_14, %c0_15] : memref<16x96xf32, #tpu.memory_space<vmem>>, vector<16x96xf32>
      tpu.vector_store %arg6[%c0_14, %c0_15], %15 {strides = array<i32>} : memref<16x96xf32, #tpu.memory_space<vmem>>, vector<16x96xf32>,
    } else {
    }
    return
  }
  func.func @transform_0(%arg0: i32, %arg1: i32, %arg2: i32) -> (i32, i32) {
    %c0_i32 = arith.constant 0 : i32
    return %arg0, %arg2 : i32, i32
  }
  func.func @transform_1(%arg0: i32, %arg1: i32, %arg2: i32) -> (i32, i32) {
    %c0_i32 = arith.constant 0 : i32
    return %arg2, %arg1 : i32, i32
  }
  func.func @transform_2(%arg0: i32, %arg1: i32, %arg2: i32) -> (i32, i32) {
    %c0_i32 = arith.constant 0 : i32
    %c0_i32_0 = arith.constant 0 : i32
    return %c0_i32, %arg1 : i32, i32
  }
  func.func @transform_3(%arg0: i32, %arg1: i32, %arg2: i32) -> (i32, i32) {
    %c0_i32 = arith.constant 0 : i32
    return %arg0, %arg1 : i32, i32
  }
}

module attributes {stable_mosaic.version = 11 : i64} {
  func.func @_flash_rel_attn_kernel(%arg0: i32, %arg1: i32, %arg2: i32, %arg3: memref<1x8x8xf32, #tpu.memory_space<vmem>>, %arg4: memref<1x8x8xf32, #tpu.memory_space<vmem>>, %arg5: memref<1x8x8xf32, #tpu.memory_space<vmem>>, %arg6: memref<8x5xf32, #tpu.memory_space<vmem>>, %arg7: memref<5x8xf32, #tpu.memory_space<vmem>>, %arg8: memref<1x8x8xf32, #tpu.memory_space<vmem>>, %arg9: memref<8x1xf32, #tpu.memory_space<vmem>>, %arg10: memref<8x1xf32, #tpu.memory_space<vmem>>, %arg11: memref<8x8xf32, #tpu.memory_space<vmem>>) attributes {dimension_semantics = [#tpu.dimension_semantics<parallel>, #tpu.dimension_semantics<parallel>, #tpu.dimension_semantics<arbitrary>], iteration_bounds = array<i64: 8, 1, 1>, scalar_prefetch = 0 : i64, scratch_operands = 3 : i64, tpu.core_type = #tpu.core_type<tc>, window_params = [{transform_indices = @transform_0, window_bounds = array<i64: 1, 8, 8>}, {transform_indices = @transform_1, window_bounds = array<i64: 1, 8, 8>}, {transform_indices = @transform_2, window_bounds = array<i64: 1, 8, 8>}, {pipeline_mode = #tpu.pipeline_mode<synchronous>, transform_indices = @transform_3, window_bounds = array<i64: 8, 5>}, {pipeline_mode = #tpu.pipeline_mode<synchronous>, transform_indices = @transform_4, window_bounds = array<i64: 5, 8>}, {transform_indices = @transform_5, window_bounds = array<i64: 1, 8, 8>}]} {
    %c0_i32 = arith.constant 0 : i32
    %0 = arith.cmpi eq, %arg2, %c0_i32 : i32
    %1 = arith.extui %0 : i1 to i32
    %c0_i32_0 = arith.constant 0 : i32
    %2 = arith.cmpi ne, %1, %c0_i32_0 : i32
    scf.if %2 {
      %cst_52 = arith.constant 0xFF800000 : f32
      %142 = vector.broadcast %cst_52 : f32 to vector<8x1xf32>
      %c0_53 = arith.constant 0 : index
      %c0_54 = arith.constant 0 : index
      %143 = vector.load %arg9[%c0_53, %c0_54] : memref<8x1xf32, #tpu.memory_space<vmem>>, vector<8x1xf32>
      tpu.vector_store %arg9[%c0_53, %c0_54], %142 {strides = array<i32>} : memref<8x1xf32, #tpu.memory_space<vmem>>, vector<8x1xf32>,
      %cst_55 = arith.constant 0.000000e+00 : f32
      %144 = vector.broadcast %cst_55 : f32 to vector<8x1xf32>
      %c0_56 = arith.constant 0 : index
      %c0_57 = arith.constant 0 : index
      %145 = vector.load %arg10[%c0_56, %c0_57] : memref<8x1xf32, #tpu.memory_space<vmem>>, vector<8x1xf32>
      tpu.vector_store %arg10[%c0_56, %c0_57], %144 {strides = array<i32>} : memref<8x1xf32, #tpu.memory_space<vmem>>, vector<8x1xf32>,
      %cst_58 = arith.constant 0.000000e+00 : f32
      %146 = vector.broadcast %cst_58 : f32 to vector<8x8xf32>
      %c0_59 = arith.constant 0 : index
      %c0_60 = arith.constant 0 : index
      %147 = vector.load %arg11[%c0_59, %c0_60] : memref<8x8xf32, #tpu.memory_space<vmem>>, vector<8x8xf32>
      tpu.vector_store %arg11[%c0_59, %c0_60], %146 {strides = array<i32>} : memref<8x8xf32, #tpu.memory_space<vmem>>, vector<8x8xf32>,
    } else {
    }
    %c0 = arith.constant 0 : index
    %c0_1 = arith.constant 0 : index
    %c0_2 = arith.constant 0 : index
    %3 = vector.load %arg3[%c0, %c0_1, %c0_2] : memref<1x8x8xf32, #tpu.memory_space<vmem>>, vector<1x8x8xf32>
    %4 = vector.shape_cast %3 : vector<1x8x8xf32> to vector<8x8xf32>
    %c0_3 = arith.constant 0 : index
    %c0_4 = arith.constant 0 : index
    %c0_5 = arith.constant 0 : index
    %5 = vector.load %arg4[%c0_3, %c0_4, %c0_5] : memref<1x8x8xf32, #tpu.memory_space<vmem>>, vector<1x8x8xf32>
    %6 = vector.shape_cast %5 : vector<1x8x8xf32> to vector<8x8xf32>
    %c0_6 = arith.constant 0 : index
    %c0_7 = arith.constant 0 : index
    %c0_8 = arith.constant 0 : index
    %7 = vector.load %arg5[%c0_6, %c0_7, %c0_8] : memref<1x8x8xf32, #tpu.memory_space<vmem>>, vector<1x8x8xf32>
    %8 = vector.shape_cast %7 : vector<1x8x8xf32> to vector<8x8xf32>
    %cst = arith.constant dense<0.000000e+00> : vector<8x8xf32>
    %9 = tpu.matmul %4, %6, %cst {dimension_numbers = #tpu.dot_dimension_numbers<[1], [1], [0], [0], [0, 0, 1, 0], [], []>} : vector<8x8xf32>, vector<8x8xf32>, vector<8x8xf32> -> vector<8x8xf32>
    %c0_9 = arith.constant 0 : index
    %c0_10 = arith.constant 0 : index
    %10 = vector.load %arg6[%c0_9, %c0_10] : memref<8x5xf32, #tpu.memory_space<vmem>>, vector<8x5xf32>
    %cst_11 = arith.constant dense<0.000000e+00> : vector<8x5xf32>
    %11 = tpu.matmul %4, %10, %cst_11 {dimension_numbers = #tpu.dot_dimension_numbers<[1], [0], [0], [1], [0, 0, 1, 1], [], []>} : vector<8x8xf32>, vector<8x5xf32>, vector<8x5xf32> -> vector<8x5xf32>
    %c8_i32 = arith.constant 8 : i32
    %12 = arith.muli %arg1, %c8_i32 : i32
    %13 = tpu.iota {dimensions = array<i32: 0>} : vector<8x8xi32>
    %14 = vector.broadcast %12 : i32 to vector<8x8xi32>
    %15 = arith.addi %14, %13 : vector<8x8xi32>
    %c8_i32_12 = arith.constant 8 : i32
    %16 = arith.muli %arg2, %c8_i32_12 : i32
    %17 = tpu.iota {dimensions = array<i32: 1>} : vector<8x8xi32>
    %18 = vector.broadcast %16 : i32 to vector<8x8xi32>
    %19 = arith.addi %18, %17 : vector<8x8xi32>
    %20 = arith.subi %19, %15 : vector<8x8xi32>
    %c-2_i32 = arith.constant -2 : i32
    %c2_i32 = arith.constant 2 : i32
    %21 = vector.broadcast %c-2_i32 : i32 to vector<8x8xi32>
    %22 = arith.maxsi %21, %20 : vector<8x8xi32>
    %23 = vector.broadcast %c2_i32 : i32 to vector<8x8xi32>
    %24 = arith.minsi %23, %22 : vector<8x8xi32>
    %c2_i32_13 = arith.constant 2 : i32
    %25 = vector.broadcast %c2_i32_13 : i32 to vector<8x8xi32>
    %26 = arith.addi %24, %25 : vector<8x8xi32>
    %c0_i32_14 = arith.constant 0 : i32
    %27 = vector.broadcast %c0_i32_14 : i32 to vector<8x8xi32>
    %28 = arith.cmpi eq, %26, %27 : vector<8x8xi32>
    %c1_i32 = arith.constant 1 : i32
    %29 = vector.broadcast %c1_i32 : i32 to vector<8x8xi32>
    %30 = arith.cmpi eq, %26, %29 : vector<8x8xi32>
    %c2_i32_15 = arith.constant 2 : i32
    %31 = vector.broadcast %c2_i32_15 : i32 to vector<8x8xi32>
    %32 = arith.cmpi eq, %26, %31 : vector<8x8xi32>
    %c3_i32 = arith.constant 3 : i32
    %33 = vector.broadcast %c3_i32 : i32 to vector<8x8xi32>
    %34 = arith.cmpi eq, %26, %33 : vector<8x8xi32>
    %c4_i32 = arith.constant 4 : i32
    %35 = vector.broadcast %c4_i32 : i32 to vector<8x8xi32>
    %36 = arith.cmpi eq, %26, %35 : vector<8x8xi32>
    %cst_16 = arith.constant 0.000000e+00 : f32
    %37 = vector.broadcast %cst_16 : f32 to vector<8x8xf32>
    %38 = vector.extract_strided_slice %11 {offsets = [0, 0], sizes = [8, 1], strides = [1, 1]} : vector<8x5xf32> to vector<8x1xf32>
    %cst_17 = arith.constant 0.000000e+00 : f32
    %39 = vector.shape_cast %38 : vector<8x1xf32> to vector<8x1xf32>
    %40 = vector.broadcast %39 : vector<8x1xf32> to vector<8x8xf32>
    %41 = vector.broadcast %cst_17 : f32 to vector<8x8xf32>
    %42 = arith.select %28, %40, %41 : vector<8x8xi1>, vector<8x8xf32>
    %43 = arith.addf %37, %42 : vector<8x8xf32>
    %44 = vector.extract_strided_slice %11 {offsets = [0, 1], sizes = [8, 1], strides = [1, 1]} : vector<8x5xf32> to vector<8x1xf32>
    %cst_18 = arith.constant 0.000000e+00 : f32
    %45 = vector.shape_cast %44 : vector<8x1xf32> to vector<8x1xf32>
    %46 = vector.broadcast %45 : vector<8x1xf32> to vector<8x8xf32>
    %47 = vector.broadcast %cst_18 : f32 to vector<8x8xf32>
    %48 = arith.select %30, %46, %47 : vector<8x8xi1>, vector<8x8xf32>
    %49 = arith.addf %43, %48 : vector<8x8xf32>
    %50 = vector.extract_strided_slice %11 {offsets = [0, 2], sizes = [8, 1], strides = [1, 1]} : vector<8x5xf32> to vector<8x1xf32>
    %cst_19 = arith.constant 0.000000e+00 : f32
    %51 = vector.shape_cast %50 : vector<8x1xf32> to vector<8x1xf32>
    %52 = vector.broadcast %51 : vector<8x1xf32> to vector<8x8xf32>
    %53 = vector.broadcast %cst_19 : f32 to vector<8x8xf32>
    %54 = arith.select %32, %52, %53 : vector<8x8xi1>, vector<8x8xf32>
    %55 = arith.addf %49, %54 : vector<8x8xf32>
    %56 = vector.extract_strided_slice %11 {offsets = [0, 3], sizes = [8, 1], strides = [1, 1]} : vector<8x5xf32> to vector<8x1xf32>
    %cst_20 = arith.constant 0.000000e+00 : f32
    %57 = vector.shape_cast %56 : vector<8x1xf32> to vector<8x1xf32>
    %58 = vector.broadcast %57 : vector<8x1xf32> to vector<8x8xf32>
    %59 = vector.broadcast %cst_20 : f32 to vector<8x8xf32>
    %60 = arith.select %34, %58, %59 : vector<8x8xi1>, vector<8x8xf32>
    %61 = arith.addf %55, %60 : vector<8x8xf32>
    %62 = vector.extract_strided_slice %11 {offsets = [0, 4], sizes = [8, 1], strides = [1, 1]} : vector<8x5xf32> to vector<8x1xf32>
    %cst_21 = arith.constant 0.000000e+00 : f32
    %63 = vector.shape_cast %62 : vector<8x1xf32> to vector<8x1xf32>
    %64 = vector.broadcast %63 : vector<8x1xf32> to vector<8x8xf32>
    %65 = vector.broadcast %cst_21 : f32 to vector<8x8xf32>
    %66 = arith.select %36, %64, %65 : vector<8x8xi1>, vector<8x8xf32>
    %67 = arith.addf %61, %66 : vector<8x8xf32>
    %68 = arith.addf %9, %67 : vector<8x8xf32>
    %cst_22 = arith.constant 5.000000e-01 : f32
    %69 = vector.broadcast %cst_22 : f32 to vector<8x8xf32>
    %70 = arith.mulf %68, %69 : vector<8x8xf32>
    %c0_23 = arith.constant 0 : index
    %c0_24 = arith.constant 0 : index
    %71 = vector.load %arg9[%c0_23, %c0_24] : memref<8x1xf32, #tpu.memory_space<vmem>>, vector<8x1xf32>
    %cst_25 = arith.constant dense<0xFF800000> : vector<8xf32>
    %72 = vector.multi_reduction <maximumf>, %70, %cst_25 [1] : vector<8x8xf32> to vector<8xf32>
    %73 = vector.shape_cast %72 : vector<8xf32> to vector<8x1xf32>
    %74 = arith.maximumf %71, %73 : vector<8x1xf32>
    %75 = arith.subf %71, %74 : vector<8x1xf32>
    %76 = math.exp %75 : vector<8x1xf32>
    %77 = vector.broadcast %74 : vector<8x1xf32> to vector<8x8xf32>
    %78 = arith.subf %70, %77 : vector<8x8xf32>
    %79 = math.exp %78 : vector<8x8xf32>
    %c0_26 = arith.constant 0 : index
    %c0_27 = arith.constant 0 : index
    %80 = vector.load %arg10[%c0_26, %c0_27] : memref<8x1xf32, #tpu.memory_space<vmem>>, vector<8x1xf32>
    %81 = arith.mulf %76, %80 : vector<8x1xf32>
    %cst_28 = arith.constant dense<0.000000e+00> : vector<8xf32>
    %82 = vector.multi_reduction <add>, %79, %cst_28 [1] : vector<8x8xf32> to vector<8xf32>
    %83 = vector.shape_cast %82 : vector<8xf32> to vector<8x1xf32>
    %84 = arith.addf %81, %83 : vector<8x1xf32>
    %c0_29 = arith.constant 0 : index
    %c0_30 = arith.constant 0 : index
    %85 = vector.load %arg10[%c0_29, %c0_30] : memref<8x1xf32, #tpu.memory_space<vmem>>, vector<8x1xf32>
    tpu.vector_store %arg10[%c0_29, %c0_30], %84 {strides = array<i32>} : memref<8x1xf32, #tpu.memory_space<vmem>>, vector<8x1xf32>,
    %c0_31 = arith.constant 0 : index
    %c0_32 = arith.constant 0 : index
    %86 = vector.load %arg9[%c0_31, %c0_32] : memref<8x1xf32, #tpu.memory_space<vmem>>, vector<8x1xf32>
    tpu.vector_store %arg9[%c0_31, %c0_32], %74 {strides = array<i32>} : memref<8x1xf32, #tpu.memory_space<vmem>>, vector<8x1xf32>,
    %cst_33 = arith.constant dense<0.000000e+00> : vector<8x8xf32>
    %87 = tpu.matmul %79, %8, %cst_33 {dimension_numbers = #tpu.dot_dimension_numbers<[1], [0], [0], [1], [0, 0, 1, 1], [], []>} : vector<8x8xf32>, vector<8x8xf32>, vector<8x8xf32> -> vector<8x8xf32>
    %c0_34 = arith.constant 0 : index
    %c0_35 = arith.constant 0 : index
    %88 = vector.load %arg7[%c0_34, %c0_35] : memref<5x8xf32, #tpu.memory_space<vmem>>, vector<5x8xf32>
    %cst_36 = arith.constant 0.000000e+00 : f32
    %89 = vector.broadcast %cst_36 : f32 to vector<8x8xf32>
    %90 = arith.select %28, %79, %89 : vector<8x8xi1>, vector<8x8xf32>
    %cst_37 = arith.constant dense<0.000000e+00> : vector<8xf32>
    %91 = vector.multi_reduction <add>, %90, %cst_37 [1] : vector<8x8xf32> to vector<8xf32>
    %92 = vector.shape_cast %91 : vector<8xf32> to vector<8x1xf32>
    %93 = vector.extract_strided_slice %88 {offsets = [0, 0], sizes = [1, 8], strides = [1, 1]} : vector<5x8xf32> to vector<1x8xf32>
    %94 = vector.broadcast %92 : vector<8x1xf32> to vector<8x8xf32>
    %95 = vector.broadcast %93 : vector<1x8xf32> to vector<8x8xf32>
    %96 = arith.mulf %94, %95 : vector<8x8xf32>
    %97 = arith.addf %87, %96 : vector<8x8xf32>
    %cst_38 = arith.constant 0.000000e+00 : f32
    %98 = vector.broadcast %cst_38 : f32 to vector<8x8xf32>
    %99 = arith.select %30, %79, %98 : vector<8x8xi1>, vector<8x8xf32>
    %cst_39 = arith.constant dense<0.000000e+00> : vector<8xf32>
    %100 = vector.multi_reduction <add>, %99, %cst_39 [1] : vector<8x8xf32> to vector<8xf32>
    %101 = vector.shape_cast %100 : vector<8xf32> to vector<8x1xf32>
    %102 = vector.extract_strided_slice %88 {offsets = [1, 0], sizes = [1, 8], strides = [1, 1]} : vector<5x8xf32> to vector<1x8xf32>
    %103 = vector.broadcast %101 : vector<8x1xf32> to vector<8x8xf32>
    %104 = vector.broadcast %102 : vector<1x8xf32> to vector<8x8xf32>
    %105 = arith.mulf %103, %104 : vector<8x8xf32>
    %106 = arith.addf %97, %105 : vector<8x8xf32>
    %cst_40 = arith.constant 0.000000e+00 : f32
    %107 = vector.broadcast %cst_40 : f32 to vector<8x8xf32>
    %108 = arith.select %32, %79, %107 : vector<8x8xi1>, vector<8x8xf32>
    %cst_41 = arith.constant dense<0.000000e+00> : vector<8xf32>
    %109 = vector.multi_reduction <add>, %108, %cst_41 [1] : vector<8x8xf32> to vector<8xf32>
    %110 = vector.shape_cast %109 : vector<8xf32> to vector<8x1xf32>
    %111 = vector.extract_strided_slice %88 {offsets = [2, 0], sizes = [1, 8], strides = [1, 1]} : vector<5x8xf32> to vector<1x8xf32>
    %112 = vector.broadcast %110 : vector<8x1xf32> to vector<8x8xf32>
    %113 = vector.broadcast %111 : vector<1x8xf32> to vector<8x8xf32>
    %114 = arith.mulf %112, %113 : vector<8x8xf32>
    %115 = arith.addf %106, %114 : vector<8x8xf32>
    %cst_42 = arith.constant 0.000000e+00 : f32
    %116 = vector.broadcast %cst_42 : f32 to vector<8x8xf32>
    %117 = arith.select %34, %79, %116 : vector<8x8xi1>, vector<8x8xf32>
    %cst_43 = arith.constant dense<0.000000e+00> : vector<8xf32>
    %118 = vector.multi_reduction <add>, %117, %cst_43 [1] : vector<8x8xf32> to vector<8xf32>
    %119 = vector.shape_cast %118 : vector<8xf32> to vector<8x1xf32>
    %120 = vector.extract_strided_slice %88 {offsets = [3, 0], sizes = [1, 8], strides = [1, 1]} : vector<5x8xf32> to vector<1x8xf32>
    %121 = vector.broadcast %119 : vector<8x1xf32> to vector<8x8xf32>
    %122 = vector.broadcast %120 : vector<1x8xf32> to vector<8x8xf32>
    %123 = arith.mulf %121, %122 : vector<8x8xf32>
    %124 = arith.addf %115, %123 : vector<8x8xf32>
    %cst_44 = arith.constant 0.000000e+00 : f32
    %125 = vector.broadcast %cst_44 : f32 to vector<8x8xf32>
    %126 = arith.select %36, %79, %125 : vector<8x8xi1>, vector<8x8xf32>
    %cst_45 = arith.constant dense<0.000000e+00> : vector<8xf32>
    %127 = vector.multi_reduction <add>, %126, %cst_45 [1] : vector<8x8xf32> to vector<8xf32>
    %128 = vector.shape_cast %127 : vector<8xf32> to vector<8x1xf32>
    %129 = vector.extract_strided_slice %88 {offsets = [4, 0], sizes = [1, 8], strides = [1, 1]} : vector<5x8xf32> to vector<1x8xf32>
    %130 = vector.broadcast %128 : vector<8x1xf32> to vector<8x8xf32>
    %131 = vector.broadcast %129 : vector<1x8xf32> to vector<8x8xf32>
    %132 = arith.mulf %130, %131 : vector<8x8xf32>
    %133 = arith.addf %124, %132 : vector<8x8xf32>
    %c0_46 = arith.constant 0 : index
    %c0_47 = arith.constant 0 : index
    %134 = vector.load %arg11[%c0_46, %c0_47] : memref<8x8xf32, #tpu.memory_space<vmem>>, vector<8x8xf32>
    %135 = vector.broadcast %76 : vector<8x1xf32> to vector<8x8xf32>
    %136 = arith.mulf %135, %134 : vector<8x8xf32>
    %137 = arith.addf %136, %133 : vector<8x8xf32>
    %c0_48 = arith.constant 0 : index
    %c0_49 = arith.constant 0 : index
    %138 = vector.load %arg11[%c0_48, %c0_49] : memref<8x8xf32, #tpu.memory_space<vmem>>, vector<8x8xf32>
    tpu.vector_store %arg11[%c0_48, %c0_49], %137 {strides = array<i32>} : memref<8x8xf32, #tpu.memory_space<vmem>>, vector<8x8xf32>,
    %c0_i32_50 = arith.constant 0 : i32
    %139 = arith.cmpi eq, %arg2, %c0_i32_50 : i32
    %140 = arith.extui %139 : i1 to i32
    %c0_i32_51 = arith.constant 0 : i32
    %141 = arith.cmpi ne, %140, %c0_i32_51 : i32
    scf.if %141 {
      %c0_52 = arith.constant 0 : index
      %c0_53 = arith.constant 0 : index
      %142 = vector.load %arg11[%c0_52, %c0_53] : memref<8x8xf32, #tpu.memory_space<vmem>>, vector<8x8xf32>
      %c0_54 = arith.constant 0 : index
      %c0_55 = arith.constant 0 : index
      %143 = vector.load %arg10[%c0_54, %c0_55] : memref<8x1xf32, #tpu.memory_space<vmem>>, vector<8x1xf32>
      %144 = vector.broadcast %143 : vector<8x1xf32> to vector<8x8xf32>
      %145 = arith.divf %142, %144 : vector<8x8xf32>
      %c0_56 = arith.constant 0 : index
      %c0_57 = arith.constant 0 : index
      %c0_58 = arith.constant 0 : index
      %146 = vector.load %arg8[%c0_56, %c0_57, %c0_58] : memref<1x8x8xf32, #tpu.memory_space<vmem>>, vector<1x8x8xf32>
      %147 = vector.shape_cast %146 : vector<1x8x8xf32> to vector<8x8xf32>
      %148 = vector.shape_cast %145 : vector<8x8xf32> to vector<1x8x8xf32>
      tpu.vector_store %arg8[%c0_56, %c0_57, %c0_58], %148 {strides = array<i32>} : memref<1x8x8xf32, #tpu.memory_space<vmem>>, vector<1x8x8xf32>,
    } else {
    }
    return
  }
  func.func @transform_0(%arg0: i32, %arg1: i32, %arg2: i32) -> (i32, i32, i32) {
    %c0_i32 = arith.constant 0 : i32
    %c0_i32_0 = arith.constant 0 : i32
    return %arg0, %arg1, %c0_i32 : i32, i32, i32
  }
  func.func @transform_1(%arg0: i32, %arg1: i32, %arg2: i32) -> (i32, i32, i32) {
    %c0_i32 = arith.constant 0 : i32
    %c0_i32_0 = arith.constant 0 : i32
    return %arg0, %arg2, %c0_i32 : i32, i32, i32
  }
  func.func @transform_2(%arg0: i32, %arg1: i32, %arg2: i32) -> (i32, i32, i32) {
    %c0_i32 = arith.constant 0 : i32
    %c0_i32_0 = arith.constant 0 : i32
    return %arg0, %arg2, %c0_i32 : i32, i32, i32
  }
  func.func @transform_3(%arg0: i32, %arg1: i32, %arg2: i32) -> (i32, i32) {
    %c0_i32 = arith.constant 0 : i32
    %c0_i32_0 = arith.constant 0 : i32
    %c0_i32_1 = arith.constant 0 : i32
    return %c0_i32, %c0_i32_0 : i32, i32
  }
  func.func @transform_4(%arg0: i32, %arg1: i32, %arg2: i32) -> (i32, i32) {
    %c0_i32 = arith.constant 0 : i32
    %c0_i32_0 = arith.constant 0 : i32
    %c0_i32_1 = arith.constant 0 : i32
    return %c0_i32, %c0_i32_0 : i32, i32
  }
  func.func @transform_5(%arg0: i32, %arg1: i32, %arg2: i32) -> (i32, i32, i32) {
    %c0_i32 = arith.constant 0 : i32
    %c0_i32_0 = arith.constant 0 : i32
    return %arg0, %arg1, %c0_i32 : i32, i32, i32
  }
}

module attributes {stable_mosaic.version = 11 : i64} {
  func.func @_linear_kernel(%arg0: i32, %arg1: i32, %arg2: i32, %arg3: memref<16x32xf32, #tpu.memory_space<vmem>>, %arg4: memref<32x32xf32, #tpu.memory_space<vmem>>, %arg5: memref<1x32xf32, #tpu.memory_space<vmem>>, %arg6: memref<16x32xf32, #tpu.memory_space<vmem>>, %arg7: memref<16x32xf32, #tpu.memory_space<vmem>>) attributes {dimension_semantics = [#tpu.dimension_semantics<parallel>, #tpu.dimension_semantics<parallel>, #tpu.dimension_semantics<arbitrary>], iteration_bounds = array<i64: 1, 1, 1>, scalar_prefetch = 0 : i64, scratch_operands = 1 : i64, tpu.core_type = #tpu.core_type<tc>, window_params = [{transform_indices = @transform_0, window_bounds = array<i64: 16, 32>}, {transform_indices = @transform_1, window_bounds = array<i64: 32, 32>}, {transform_indices = @transform_2, window_bounds = array<i64: 1, 32>}, {transform_indices = @transform_3, window_bounds = array<i64: 16, 32>}]} {
    %c0_i32 = arith.constant 0 : i32
    %0 = arith.cmpi eq, %arg2, %c0_i32 : i32
    %1 = arith.extui %0 : i1 to i32
    %c0_i32_0 = arith.constant 0 : i32
    %2 = arith.cmpi ne, %1, %c0_i32_0 : i32
    scf.if %2 {
      %cst_10 = arith.constant 0.000000e+00 : f32
      %12 = vector.broadcast %cst_10 : f32 to vector<16x32xf32>
      %c0_11 = arith.constant 0 : index
      %c0_12 = arith.constant 0 : index
      %13 = vector.load %arg7[%c0_11, %c0_12] : memref<16x32xf32, #tpu.memory_space<vmem>>, vector<16x32xf32>
      tpu.vector_store %arg7[%c0_11, %c0_12], %12 {strides = array<i32>} : memref<16x32xf32, #tpu.memory_space<vmem>>, vector<16x32xf32>,
    } else {
    }
    %c0 = arith.constant 0 : index
    %c0_1 = arith.constant 0 : index
    %3 = vector.load %arg7[%c0, %c0_1] : memref<16x32xf32, #tpu.memory_space<vmem>>, vector<16x32xf32>
    %c0_2 = arith.constant 0 : index
    %c0_3 = arith.constant 0 : index
    %4 = vector.load %arg3[%c0_2, %c0_3] : memref<16x32xf32, #tpu.memory_space<vmem>>, vector<16x32xf32>
    %c0_4 = arith.constant 0 : index
    %c0_5 = arith.constant 0 : index
    %5 = vector.load %arg4[%c0_4, %c0_5] : memref<32x32xf32, #tpu.memory_space<vmem>>, vector<32x32xf32>
    %cst = arith.constant dense<0.000000e+00> : vector<16x32xf32>
    %6 = tpu.matmul %4, %5, %cst {dimension_numbers = #tpu.dot_dimension_numbers<[1], [0], [0], [1], [0, 0, 1, 1], [], []>} : vector<16x32xf32>, vector<32x32xf32>, vector<16x32xf32> -> vector<16x32xf32>
    %7 = arith.addf %3, %6 : vector<16x32xf32>
    %c0_6 = arith.constant 0 : index
    %c0_7 = arith.constant 0 : index
    %8 = vector.load %arg7[%c0_6, %c0_7] : memref<16x32xf32, #tpu.memory_space<vmem>>, vector<16x32xf32>
    tpu.vector_store %arg7[%c0_6, %c0_7], %7 {strides = array<i32>} : memref<16x32xf32, #tpu.memory_space<vmem>>, vector<16x32xf32>,
    %c0_i32_8 = arith.constant 0 : i32
    %9 = arith.cmpi eq, %arg2, %c0_i32_8 : i32
    %10 = arith.extui %9 : i1 to i32
    %c0_i32_9 = arith.constant 0 : i32
    %11 = arith.cmpi ne, %10, %c0_i32_9 : i32
    scf.if %11 {
      %c0_10 = arith.constant 0 : index
      %c0_11 = arith.constant 0 : index
      %12 = vector.load %arg7[%c0_10, %c0_11] : memref<16x32xf32, #tpu.memory_space<vmem>>, vector<16x32xf32>
      %c0_12 = arith.constant 0 : index
      %c0_13 = arith.constant 0 : index
      %13 = vector.load %arg5[%c0_12, %c0_13] : memref<1x32xf32, #tpu.memory_space<vmem>>, vector<1x32xf32>
      %14 = vector.broadcast %13 : vector<1x32xf32> to vector<16x32xf32>
      %15 = arith.addf %12, %14 : vector<16x32xf32>
      %c0_14 = arith.constant 0 : index
      %c0_15 = arith.constant 0 : index
      %16 = vector.load %arg6[%c0_14, %c0_15] : memref<16x32xf32, #tpu.memory_space<vmem>>, vector<16x32xf32>
      tpu.vector_store %arg6[%c0_14, %c0_15], %15 {strides = array<i32>} : memref<16x32xf32, #tpu.memory_space<vmem>>, vector<16x32xf32>,
    } else {
    }
    return
  }
  func.func @transform_0(%arg0: i32, %arg1: i32, %arg2: i32) -> (i32, i32) {
    %c0_i32 = arith.constant 0 : i32
    return %arg0, %arg2 : i32, i32
  }
  func.func @transform_1(%arg0: i32, %arg1: i32, %arg2: i32) -> (i32, i32) {
    %c0_i32 = arith.constant 0 : i32
    return %arg2, %arg1 : i32, i32
  }
  func.func @transform_2(%arg0: i32, %arg1: i32, %arg2: i32) -> (i32, i32) {
    %c0_i32 = arith.constant 0 : i32
    %c0_i32_0 = arith.constant 0 : i32
    return %c0_i32, %arg1 : i32, i32
  }
  func.func @transform_3(%arg0: i32, %arg1: i32, %arg2: i32) -> (i32, i32) {
    %c0_i32 = arith.constant 0 : i32
    return %arg0, %arg1 : i32, i32
  }
}

</mosaic_0001>

<bundles_post_ra>
// kernel: mha_forward.3
= control target key start
LH: loop header
LB: loop body
LE: loop exit
PB: predicated region body
PF: predicated region fallthrough
CT: control target
= control target key end

     0   :  { %vm29_vm0 = vcmask 261120   ;;  %vm18_vm1 = vcmask 785408   ;;  %v165_v3 = vmov 0.0   ;;  %s221_s1 = inlined_call_operand.vmem [shape: f32[32,96], index: 1, kind: input, shape index: {}]   ;;  %s222_s0 = inlined_call_operand.vmem [shape: f32[16,32], index: 0, kind: input, shape index: {}]   ;;  %s223_s2 = inlined_call_operand.vmem [shape: f32[1,96], index: 2, kind: input, shape index: {}]   ;;  %s224_s3 = inlined_call_operand.vmem [shape: f32[16,96], index: 3, kind: output, shape index: {}]  }
   0x1   :  { %v25_v0 = vld [vmem:[%s221_s1] sm:$0xff]  ;;  %v26_v1 = vld [vmem:[%s221_s1 + $0x8] sm:$0xff]  ;;  %v27_v2 = vld [vmem:[%s221_s1 + $0x10] sm:$0xff]  ;;  %20 = vst.msk [vmem:[#allocation2 + $0x8] sm:$0xff] %vm18_vm1, %v165_v3 }
   0x2   :  { %19 = vst.msk [vmem:[#allocation2] sm:$0xff] %vm18_vm1, %v165_v3  ;;  %v156_v4 = vpack.c.bf16 %v26_v1, %v25_v0  ;;  %v28_v5 = vld [vmem:[%s221_s1 + $0x18] sm:$0xff]  ;;  %v23_v6 = vld [vmem:[%s222_s0] sm:$0xff]  ;;  %v24_v8 = vld [vmem:[%s222_s0 + $0x8] sm:$0xff] }
   0x3   :  { %v160_v7 = vpack.c.bf16 %v28_v5, %v27_v2  ;;  %153 = vmatprep.mubr.msk.f32.mxu0 %vm29_vm0, %v23_v6  ;;  %v138_v15 = vld [vmem:[%s223_s2] ss:$0 sm:$0xff] }
   0x4   :  { %157 = vmatprep.subr.bf16.mxu0 %v156_v4 }
   0x5   :  { %159 = vmatpush3.bf16.msra.mxu0 %v156_v4 }
   0x6   :  { %161 = vmatprep.subr.bf16.mxu0 %v160_v7 }
   0x8   :  { %v22_v9 = vld [vmem:[#allocation2 + $0x8] sm:$0xff] }
   0x9   :  { %163 = vmatpush3.bf16.msra.mxu0 %v160_v7  ;;  %v21_v10 = vld [vmem:[#allocation2] sm:$0xff] }
   0xc   :  { %154 = vmatmul.mubr.msk.f32.vlgmr.msra.gmra.mrb[0].mxu0 %vm29_vm0, %v24_v8 }
  0xdf   :  { %v155_v11 = vpop.f32.mrb[0].mxu0 }
  0xe0   :  { %v112_v12 = vadd.f32 %v155_v11, %v22_v9  ;;  %v102_v13 = vpop.f32.mrb[1].mxu0 }
  0xe1   :  { %v111_v14 = vadd.f32 %v102_v13, %v21_v10 }
  0xe2   :  { %115 = vst.msk [vmem:[#allocation2 + $0x8] sm:$0xff] %vm18_vm1, %v112_v12 }
  0xe3   :  { %114 = vst.msk [vmem:[#allocation2] sm:$0xff] %vm18_vm1, %v111_v14 }
  0xe9   :  { %v120_v16 = vld [vmem:[#allocation2 + $0x8] sm:$0xff] }
  0xea   :  { %v129_v17 = vadd.f32 %v138_v15, %v120_v16  ;;  %v119_v18 = vld [vmem:[#allocation2] sm:$0xff] }
  0xeb   :  { %v128_v19 = vadd.f32 %v138_v15, %v119_v18 }
  0xec   :  { %131 = vst.msk [vmem:[%s224_s3 + $0x8] sm:$0xff] %vm18_vm1, %v129_v17 }
  0xed   :  { %130 = vst.msk [vmem:[%s224_s3] sm:$0xff] %vm18_vm1, %v128_v19 }

// kernel: mha_forward.5
= control target key start
LH: loop header
LB: loop body
LE: loop exit
PB: predicated region body
PF: predicated region fallthrough
CT: control target
= control target key end

     0   :  { %vm19_vm0 = vcmask 261120   ;;  %v204_v6 = vmov 0.0   ;;  %s269_s0 = inlined_call_operand.vmem [shape: f32[16,32], index: 0, kind: input, shape index: {}]   ;;  %s270_s1 = inlined_call_operand.vmem [shape: f32[32,32], index: 1, kind: input, shape index: {}]   ;;  %s271_s2 = inlined_call_operand.vmem [shape: f32[1,32], index: 2, kind: input, shape index: {}]   ;;  %s272_s3 = inlined_call_operand.hbm [shape: f32[16,32], index: 3, kind: output, shape index: {}]  }
   0x1   :  { %v26_v0 = vld [vmem:[%s270_s1] sm:$0xff]  ;;  %v27_v1 = vld [vmem:[%s270_s1 + $0x8] sm:$0xff]  ;;  %v28_v2 = vld [vmem:[%s270_s1 + $0x10] sm:$0xff]  ;;  %21 = vst.msk [vmem:[#allocation2 + $0x8] sm:$0xff] %vm19_vm0, %v204_v6 }
   0x2   :  { %v168_v3 = vpack.c.bf16 %v27_v1, %v26_v0  ;;  %v29_v4 = vld [vmem:[%s270_s1 + $0x18] sm:$0xff]  ;;  %v24_v5 = vld [vmem:[%s269_s0] sm:$0xff]  ;;  %20 = vst.msk [vmem:[#allocation2] sm:$0xff] %vm19_vm0, %v204_v6 }
   0x3   :  { %v172_v7 = vpack.c.bf16 %v29_v4, %v28_v2  ;;  %165 = vmatprep.mubr.msk.f32.mxu0 %vm19_vm0, %v24_v5 }
   0x4   :  { %8 = vsyncpa [#allocation4], 0  ;;  %169 = vmatprep.subr.bf16.mxu0 %v168_v3  ;;  %v25_v8 = vld [vmem:[%s269_s0 + $0x8] sm:$0xff]  ;;  %v150_v15 = vld [vmem:[%s271_s2] ss:$0 sm:$0xff]  ;;  %s205_s25 = smov [#allocation3]  }
   0x5   :  { %171 = vmatpush3.bf16.msra.mxu0 %v168_v3  ;;  %s137_s26 = sshll.u32 %s205_s25, 4  ;;  %s138_s26 = int_to_ptr.vmem [resolvable:$true] %s137_s26 }
   0x6   :  { %173 = vmatprep.subr.bf16.mxu0 %v172_v7  ;;  %s180_s0 = scalar_lea.vmem %s138_s26, 256  ;;  %p185_p1 = scmp.lt.s32.totalorder %s138_s26, %s138_s26 }
   0x7   :  { %p181_p0 = scmp.ne.s32.totalorder %s138_s26, %s180_s0  ;;  %p186_p2 = scmp.lt.s32.totalorder %s180_s0, %s180_s0 }
   0x8   :  { %v23_v9 = vld [vmem:[#allocation2 + $0x8] sm:$0xff] }
   0x9   :  { %175 = vmatpush3.bf16.msra.mxu0 %v172_v7  ;;  %v22_v10 = vld [vmem:[#allocation2] sm:$0xff]  ;;  %p187_p3 = por %p186_p2, %p185_p1 }
   0xb   :  { %p188_p4 = pnand %p187_p3, %p181_p0 }
   0xc   :  { %166 = vmatmul.mubr.msk.f32.vlgmr.msra.gmra.mrb[0].mxu0 %vm19_vm0, %v25_v8 }
  0xdf   :  { %v167_v11 = vpop.f32.mrb[0].mxu0 }
  0xe0   :  { %v113_v12 = vadd.f32 %v167_v11, %v23_v9  ;;  %v103_v13 = vpop.f32.mrb[1].mxu0 }
  0xe1   :  { %v112_v14 = vadd.f32 %v103_v13, %v22_v10 }
  0xe2   :  { %115 = vst.msk [vmem:[#allocation2 + $0x8] sm:$0xff] %vm19_vm0, %v113_v12 }
  0xe3   :  { %114 = vst.msk [vmem:[#allocation2] sm:$0xff] %vm19_vm0, %v112_v14 }
  0xe9   :  { %v120_v16 = vld [vmem:[#allocation2 + $0x8] sm:$0xff] }
  0xea   :  { %v119_v17 = vld [vmem:[#allocation2] sm:$0xff]  ;;  %v129_v18 = vadd.f32 %v150_v15, %v120_v16 }
  0xeb   :  { %v128_v19 = vadd.f32 %v150_v15, %v119_v17 }
  0xec   :  { %131 = vst.msk [vmem:[#allocation3 + $0x8] sm:$0xff] %vm19_vm0, %v129_v18 }
  0xed   :  { %130 = vst.msk [vmem:[#allocation3] sm:$0xff] %vm19_vm0, %v128_v19 }
  0xee   :  { %191 = shalt.err (!%p188_p4)
}
  0xef   :  { %s192_s28 = scalar_lea.hbm %s272_s3, 256 }
  0xf0   :  { %p193_p5 = scmp.ne.s32.totalorder %s272_s3, %s192_s28  ;;  %p196_p6 = scmp.lt.u32.totalorder %s192_s28, %s272_s3 }
  0xf2   :  { %p198_p7 = pnand %p196_p6, %p193_p5 }
  0xf4   :  { %201 = shalt.err (!%p198_p7)
}
  0xf5   :  { %s206_s6 = smov 128   ;;  %s207_s7 = smov 8  }
  0xf6   :  { %143 = dma.vmem_to_hbm [thread:$0]  %s138_s26, 256, %s272_s3, [#allocation4], %s206_s6, %s206_s6, %s207_s7  }
  0xf7   :  { %202 = dma.done.wait [#allocation4], 256  }
  0xf8   :  { %203 = vsyncadd [#allocation4], 4294967040 }
  0xf9   :  { %147 = vsyncpa [#allocation4], 1 }

// kernel: mha_forward.4
= control target key start
LH: loop header
LB: loop body
LE: loop exit
PB: predicated region body
PF: predicated region fallthrough
CT: control target
= control target key end

     0   :  { %s947_s18 = smov 0   ;;  %s949_s19 = smov 0   ;;  %s1037_s0 = inlined_call_operand.vmem [shape: f32[8,8,8], index: 0, kind: input, shape index: {}]   ;;  %s1038_s1 = inlined_call_operand.vmem [shape: f32[8,8,8], index: 1, kind: input, shape index: {}]   ;;  %s1039_s2 = inlined_call_operand.vmem [shape: f32[8,8,8], index: 2, kind: input, shape index: {}]   ;;  %s1040_s3 = inlined_call_operand.vmem [shape: f32[8,5], index: 3, kind: input, shape index: {}]   ;;  %s1041_s4 = inlined_call_operand.vmem [shape: f32[5,8], index: 4, kind: input, shape index: {}]   ;;  %s1042_s5 = inlined_call_operand.vmem [shape: f32[8,8,8], index: 5, kind: output, shape index: {}]  }
   0x1   :  { %s951_s20 = smov 0  }
   0x2 LB: > { %s34_s21 = sadd.s32 1, %s903_s19  ;;  %p808_p0 = scmp.ge.s32.totalorder %s907_s20, 1  ;;  %s907_s20 = sphi %s951_s20, %s15_s20   ;;  %s903_s19 = sphi %s949_s19, %s1044_s19   ;;  %s899_s18 = sphi %s947_s18, %s1043_s18  }
   0x3   : > { %p36_p1 = scmp.ge.s32.totalorder %s34_s21, 8  ;;  %p240_p2 = scmp.lt.s32.totalorder %s907_s20, 9 }
   0x5   : > { %s1046_s21 = smov (%p36_p1, %s34_s21), 0  ;;  %p241_p3 = pnand %p808_p0, %p240_p2 }
   0x6   : > { %vm321_vm0 = vcmask (!%p241_p3), 64512   ;;  %v326_v0 = vld [vmem:[%s1040_s3] sm:$0xff] (!%p241_p3)  ;;  %p286_p4 = scmp.lt.s32.totalorder (!%p241_p3), %s899_s18, 7  ;;  %v909_v1 = vmov (!%p241_p3), 0.0   ;;  %vm910_vm1 = vmmov (!%p241_p3), 0   ;;  %v911_v2 = vmov (!%p241_p3), 2  }
   0x7   : > { %244 = sbr.rel (%p241_p3) target bundleno = 959 (0x3bf), region = 40  ;;  %322 = vst.msk [vmem:[#allocation4] sm:$0xff] (!%p241_p3), %vm321_vm0, %v909_v1  ;;  %825 = vmatprep.subr.mxu0 (!%p241_p3), %v909_v1  ;;  %827 = vmatprep.mubr.msk.f32.mxu0 (!%p241_p3), %vm910_vm1, %v909_v1  ;;  %v912_v3 = vmov (!%p241_p3), 0   ;;  %v913_v8 = vmov (!%p241_p3), 3   ;;  %v914_v9 = vmov (!%p241_p3), 1   ;;  %v915_v10 = vmov (!%p241_p3), 4  }
   0x8   : > { %826 = vmatpush3.msra.mxu0 (!%p241_p3), %v326_v0  ;;  %830 = vmatprep.subr.mxu1 (!%p241_p3), %v909_v1  ;;  %vm318_vm2 = vcmask (!%p241_p3), 7168   ;;  %v916_v13 = vmov (!%p241_p3), -inf   ;;  %v402_v14 = vlaneseq (!%p241_p3) }
   0x9   : > { %832 = vmatprep.mubr.msk.f32.mxu1 (!%p241_p3), %vm910_vm1, %v909_v1  ;;  %874 = vset.pattern.permute.xlu1 (!%p241_p3), %v911_v2  ;;  %319 = vst.msk [vmem:[#allocation2] sm:$0xff] (!%p241_p3), %vm318_vm2, %v916_v13  ;;  %320 = vst.msk [vmem:[#allocation3] sm:$0xff] (!%p241_p3), %vm318_vm2, %v909_v1 }
   0xa   : > { %872 = vset.pattern.permute.xlu0 (!%p241_p3), %v912_v3  ;;  %835 = vmatprep.subr.mxu0 (!%p241_p3), %v909_v1  ;;  %v987_v15 = vshrl.u32 (!%p241_p3), %v402_v14, 7  ;;  %v408_v16 = vand.u32 (!%p241_p3), 127, %v402_v14 }
   0xc   : > { %v411_v17 = vsub.s32 (!%p241_p3), %v408_v16, %v987_v15  ;;  %v559_v2 = vsub.s32 (!%p241_p3), 0, %v987_v15  ;;  %v671_v13 = vsub.s32 (!%p241_p3), 4, %v987_v15 }
   0xe   : > { %s1048_s18 = smov (!%p286_p4, %s899_s18), 7  ;;  %vm412_vm3 = vcmp.gt.s32.totalorder %v411_v17, 4294967294 }
   0xf   : > { %s971_s24 = sshll.u32 %s1048_s18, 3  ;;  %v413_v18 = vsel %vm412_vm3, %v411_v17, 4294967294 }
  0x10   : > { %s292_s27 = scalar_lea.vmem %s1037_s0, %s971_s24  ;;  %s299_s30 = scalar_lea.vmem %s1038_s1, %s971_s24  ;;  %vm414_vm4 = vcmp.lt.s32.totalorder %v413_v18, 2  ;;  %v527_v38 = vld [vmem:[#allocation2] sm:$0xff]  ;;  %v543_v60 = vld [vmem:[#allocation3] sm:$0xff] }
  0x11   : > { %v323_v4 = vld [vmem:[%s292_s27] sm:$0xff]  ;;  %v415_v19 = vsel %vm414_vm4, %v413_v18, 2  ;;  %s306_s8 = scalar_lea.vmem %s1039_s2, %s971_s24  ;;  %s313_s13 = scalar_lea.vmem %s1042_s5, %s971_s24 }
  0x12   : > { %828 = vmatmul.mubr.msk.f32.vlgmr.msra.gmra.mrb[0].mxu0 %vm321_vm0, %v323_v4  ;;  %v324_v5 = vld [vmem:[%s299_s30] sm:$0xff]  ;;  %v416_v20 = vadd.s32 2, %v415_v19 }
  0x13   : > { %831 = vmatpush3.xpose.msk.msra.mxu1 %vm321_vm0, %v324_v5  ;;  %837 = vmatprep.mubr.msk.f32.mxu0 %vm910_vm1, %v909_v1  ;;  %v325_v42 = vld [vmem:[%s306_s8] sm:$0xff]  ;;  %v641_v5 = vsub.s32 1, %v987_v15 }
  0x14   : > { %vm417_vm5 = vcmp.eq.s32.totalorder %v416_v20, 0  ;;  %vm418_vm6 = vcmp.eq.s32.totalorder %v416_v20, 1  ;;  %vm419_vm7 = vcmp.eq.s32.totalorder %v416_v20, 2  ;;  %vm420_vm8 = vcmp.eq.s32.totalorder %v416_v20, 3  ;;  %836 = vmatpush3.msra.mxu0 %v325_v42 }
  0x15   : > { %vm421_vm9 = vcmp.eq.s32.totalorder %v416_v20, 4 }
  0x16   : > { %833 = vmatmul.mubr.msk.f32.vlgmr.msra.gmra.mrb[0].mxu1 %vm321_vm0, %v323_v4 }
  0xe5   : > { %v397_v6 = vpop.f32.mrb[0].mxu0 }
  0xe6   : > { %436 = vperm.xlu1 %874, %v397_v6   ;;  %424 = vperm.xlu0 %872, %v397_v6   ;;  %v829_v7 = vpop.f32.mrb[1].mxu0 }
  0xe7   : > { %v651_v7 = vsub.s32 2, %v987_v15 }
  0xe9   : > { %v522_v11 = vpop.f32.mrb[0].mxu1 }
  0xea   : > { %875 = vset.pattern.permute.xlu1 %v913_v8  ;;  %873 = vset.pattern.permute.xlu0 %v914_v9  ;;  %v834_v12 = vpop.f32.mrb[1].mxu1  ;;  %v661_v8 = vsub.s32 3, %v987_v15 }
  0xeb   : > { %442 = vperm.xlu1 %875, %v397_v6   ;;  %430 = vperm.xlu0 %873, %v397_v6  }
  0xef   : > { %876 = vset.pattern.permute.xlu1 %v915_v10  ;;  %878 = vset.pattern.permute.xlu0 %v912_v3 }
  0xf0   : > { %448 = vperm.xlu1 %876, %v397_v6  }
  0xf4   : > { %877 = vset.pattern.permute.xlu1 %v912_v3  ;;  %v552_v3 = vld [vmem:[%s1041_s4] sm:$0x1f] }
  0xf5   : > { %v560_v6 = vrot.slane %v552_v3, %v559_v2  ;;  %v642_v9 = vrot.slane %v552_v3, %v641_v5  ;;  %v652_v12 = vrot.slane %v552_v3, %v651_v7  ;;  %v662_v17 = vrot.slane %v552_v3, %v661_v8 }
 0x165   : > { %v437_v21 = vpop.permute.xlu1 %436  ;;  %v425_v22 = vpop.permute.xlu0 %424 }
 0x166   : > { %v427_v25 = vsel %vm417_vm5, %v425_v22, 0.0  ;;  %v439_v28 = vsel %vm419_vm7, %v437_v21, 0.0  ;;  %v672_v22 = vrot.slane %v552_v3, %v671_v13 }
 0x16a   : > { %v443_v23 = vpop.permute.xlu1 %442  ;;  %v431_v24 = vpop.permute.xlu0 %430 }
 0x16b   : > { %v433_v26 = vsel %vm418_vm6, %v431_v24, 0.0  ;;  %v445_v30 = vsel %vm420_vm8, %v443_v23, 0.0 }
 0x16c   : > { %v434_v27 = vadd.f32 %v433_v26, %v427_v25 }
 0x16e   : > { %v440_v29 = vadd.f32 %v439_v28, %v434_v27  ;;  %v675_v27 = vld [vmem:[#allocation4] sm:$0xff] }
 0x16f   : > { %v449_v31 = vpop.permute.xlu1 %448 }
 0x170   : > { %v446_v32 = vadd.f32 %v445_v30, %v440_v29  ;;  %v451_v33 = vsel %vm421_vm9, %v449_v31, 0.0 }
 0x172   : > { %v452_v34 = vadd.f32 %v451_v33, %v446_v32 }
 0x174   : > { %v523_v35 = vadd.f32 %v522_v11, %v452_v34 }
 0x176   : > { %v526_v36 = vmul.f32 0.5, %v523_v35 }
 0x178   : > { %v528_v37 = vsel %vm321_vm0, %v526_v36, -inf }
 0x179   : > { %529 = vmax.xlane.f32.xlu0 %v528_v37 }
 0x206   : > { %v530_v39 = vpop.xlane.xlu0 %529 }
 0x207   : > { %v531_v40 = vmax.f32 %v527_v38, %v530_v39 }
 0x209   : > { %v532_v41 = vsub.f32 %v527_v38, %v531_v40  ;;  %551 = vst.msk [vmem:[#allocation2] sm:$0xff] %vm318_vm2, %v531_v40  ;;  %537 = vperm.xlu1 %877, %v531_v40  }
 0x20b   : > { %v533_v55 = vmul.f32 1.442695, %v532_v41 }
 0x288   : > { %v538_v43 = vpop.permute.xlu1 %537 }
 0x289   : > { %v540_v44 = vsub.f32 %v526_v36, %v538_v43 }
 0x28b   : > { %v541_v45 = vmul.f32 1.442695, %v540_v44 }
 0x28d   : > { %879 = vpow2.f32 %v541_v45 }
 0x28e   : > { %881 = vpow2.f32 %v533_v55 }
 0x297   : > { %v880_v46 = vpop.eup %879 }
 0x298   : > { %838 = vmatmul.mubr.msk.f32.vlgmr.msra.gmra.mrb[2].mxu0 %vm321_vm0, %v880_v46  ;;  %v545_v47 = vsel %vm321_vm0, %v880_v46, 0.0  ;;  %v553_v48 = vsel %vm417_vm5, %v880_v46, 0.0  ;;  %v655_v50 = vsel %vm420_vm8, %v880_v46, 0.0  ;;  %v635_v51 = vsel %vm418_vm6, %v880_v46, 0.0  ;;  %v882_v59 = vpop.eup %881 }
 0x299   : > { %546 = vadd.xlane.f32.xlu1 %v545_v47  ;;  %v554_v49 = vsel %vm321_vm0, %v553_v48, 0.0  ;;  %v656_v52 = vsel %vm321_vm0, %v655_v50, 0.0  ;;  %v636_v53 = vsel %vm321_vm0, %v635_v51, 0.0  ;;  %v645_v54 = vsel %vm419_vm7, %v880_v46, 0.0 }
 0x29a   : > { %555 = vadd.xlane.f32.xlu0 %v554_v49  ;;  %v646_v56 = vsel %vm321_vm0, %v645_v54, 0.0  ;;  %v665_v57 = vsel %vm421_vm9, %v880_v46, 0.0  ;;  %v544_v61 = vmul.f32 %v882_v59, %v543_v60 }
 0x29b   : > { %v666_v58 = vsel %vm321_vm0, %v665_v57, 0.0 }
 0x29d   : > { %657 = vadd.xlane.f32.xlu1 %v656_v52 }
 0x29e   : > { %637 = vadd.xlane.f32.xlu0 %v636_v53 }
 0x2a2   : > { %647 = vadd.xlane.f32.xlu0 %v646_v56 }
 0x2a6   : > { %667 = vadd.xlane.f32.xlu0 %v666_v58 }
 0x2ae   : > { %678 = vperm.xlu1 %877, %v882_v59  }
 0x326   : > { %v547_v62 = vpop.xlane.xlu1 %546 }
 0x327   : > { %v548_v63 = vadd.f32 %v547_v62, %v544_v61  ;;  %v556_v1 = vpop.xlane.xlu0 %555 }
 0x328   : > { %v561_v11 = vmul.f32 %v560_v6, %v556_v1 }
 0x329   : > { %550 = vst.msk [vmem:[#allocation3] sm:$0xff] %vm318_vm2, %v548_v63 }
 0x32a   : > { %v658_v14 = vpop.xlane.xlu1 %657 }
 0x32b   : > { %v638_v4 = vpop.xlane.xlu0 %637  ;;  %v663_v25 = vmul.f32 %v662_v17, %v658_v14 }
 0x32c   : > { %v643_v18 = vmul.f32 %v642_v9, %v638_v4 }
 0x32e   : > { %v679_v28 = vpop.permute.xlu1 %678 }
 0x32f   : > { %v648_v10 = vpop.xlane.xlu0 %647  ;;  %v681_v31 = vmul.f32 %v679_v28, %v675_v27 }
 0x330   : > { %v688_v0 = vld [vmem:[#allocation3] sm:$0xff]  ;;  %v653_v21 = vmul.f32 %v652_v12, %v648_v10 }
 0x331   : > { %691 = vperm.xlu0 %878, %v688_v0  }
 0x333   : > { %v668_v24 = vpop.xlane.xlu0 %667 }
 0x334   : > { %v673_v29 = vmul.f32 %v672_v22, %v668_v24 }
 0x36b   : > { %v631_v16 = vpop.f32.mrb[2].mxu0 }
 0x36c   : > { %v632_v19 = vadd.f32 %v631_v16, %v561_v11  ;;  %v839_v20 = vpop.f32.mrb[3].mxu0 }
 0x36e   : > { %v644_v23 = vadd.f32 %v643_v18, %v632_v19 }
 0x370   : > { %v654_v26 = vadd.f32 %v653_v21, %v644_v23 }
 0x372   : > { %v664_v30 = vadd.f32 %v663_v25, %v654_v26 }
 0x374   : > { %v674_v32 = vadd.f32 %v673_v29, %v664_v30 }
 0x376   : > { %v682_v15 = vadd.f32 %v681_v31, %v674_v32 }
 0x378   : > { %683 = vst.msk [vmem:[#allocation4] sm:$0xff] %vm321_vm0, %v682_v15 }
 0x37f   : > { %v687_v35 = vld [vmem:[#allocation4] sm:$0xff] }
 0x3b0   : > { %v692_v33 = vpop.permute.xlu0 %691 }
 0x3b1   : > { %883 = vrcp.f32 %v692_v33 }
 0x3bb   : > { %v884_v34 = vpop.eup %883 }
 0x3bc   : > { %v695_v36 = vmul.f32 %v884_v34, %v687_v35 }
 0x3be   : > { %696 = vst.msk [vmem:[%s313_s13] sm:$0xff] %vm321_vm0, %v695_v36 }
 0x3bf PF: > { %s15_s20 = sadd.s32 1, %s907_s20   ;;  %s1043_s18 = smov %s903_s19 }
 0x3c0   : > { %p12_p5 = scmp.ge.s32.totalorder %s15_s20, 10   ;;  %s1044_s19 = smov %s1046_s21 }
 0x3c2   :  { %14 = sbr.rel (!%p12_p5) target bundleno = 2 (0x2), region = 84 }

</bundles_post_ra>
